<compile_context>
chip_gen: v7x
topology: tpu7x:2x2x1
jax: 0.10.0
libtpu: 0.0.40
codegen_flags: <defaults>
</compile_context>

<pallas_src>
import functools

import jax
import jax.numpy as jnp
from jax.experimental import pallas as pl
from jax.experimental.pallas import tpu as pltpu

BG_THRESH = 0.25  # naive-style background threshold on the CAM score


def _round_up(x, m):
    return (x + m - 1) // m * m


def _pseudo_label_kernel(idx_ref, cnt_ref, cam_hbm, out_ref,
                         buf, sem, bv_ref, bi_ref,
                         *, num_channels, bg_thresh, compute_dtype):
    """Grid = (sample n, spatial tile s).  Channel loop is inside the kernel.

    idx_ref : SMEM i32 (N*C,) compacted active-channel indices (ascending
                              original order within each sample)
    cnt_ref : SMEM i32 (N,)   number of active channels per sample
    cam_hbm : HBM  (N, C, R_pad, 128) CAM, native dtype (no auto-DMA)
    out_ref : VMEM i32 (1, TR, 128)
    buf     : VMEM (2, TR, 128) cam-dtype double buffer
    sem     : DMA semaphores (2,)
    bv_ref  : VMEM (TR, 128) running best score   (compute_dtype)
    bi_ref  : VMEM i32 (TR, 128) running best channel
    """
    n = pl.program_id(0)
    s = pl.program_id(1)
    tr = bv_ref.shape[0]
    row0 = pl.multiple_of(s * tr, 8) if tr % 8 == 0 else s * tr
    cnt = cnt_ref[n]

    def channel_of(step):
        return idx_ref[n * num_channels + step]

    def start_fetch(step, slot):
        pltpu.make_async_copy(
            cam_hbm.at[n, channel_of(step), pl.ds(row0, tr), :],
            buf.at[slot], sem.at[slot]).start()

    # Prime the pipeline with the first active channel (overlaps the inits).
    @pl.when(cnt > 0)
    def _prime():
        start_fetch(0, 0)

    bv_ref[...] = jnp.full(bv_ref.shape, -jnp.inf, dtype=compute_dtype)
    bi_ref[...] = jnp.zeros(bi_ref.shape, dtype=jnp.int32)

    # Exactly cnt[n] iterations — no dead steps for inactive channels.
    @pl.loop(0, cnt)
    def _channel(step):
        slot = step & 1
        # Wait for the current channel tile.
        pltpu.make_async_copy(
            cam_hbm.at[n, 0, pl.ds(row0, tr), :],   # shape-only, for wait
            buf.at[slot], sem.at[slot]).wait()

        # Prefetch the next active channel into the other slot.
        @pl.when(step + 1 < cnt)
        def _prefetch():
            start_fetch(step + 1, 1 - slot)

        v = buf[slot].astype(compute_dtype)          # no-op for bf16/f32 cam
        take = v > bv_ref[...]                       # strict: lowest-index wins ties
        bi_ref[...] = jnp.where(take, channel_of(step), bi_ref[...])
        bv_ref[...] = jnp.where(take, v, bv_ref[...])

    # Finalize: threshold compare once in f32 (exact vs f32 reference).
    bv = bv_ref[...].astype(jnp.float32)
    fg = bv >= jnp.float32(bg_thresh)
    out_ref[0] = jnp.where(fg, bi_ref[...] + 1, 0).astype(jnp.int32)


def pseudo_label_from_cam(cam, image, label, method="naive",
                          bg_thresh=BG_THRESH):
    assert method in ("irn", "naive", "rrm"), method
    N, C, H, W = cam.shape
    assert image.shape[:2] == (N, 3), (image.shape, cam.shape)
    assert label.shape == (N, C), (label.shape, cam.shape)
    # `image` is only consumed by the CRF refinement (not implemented); the
    # naive seed depends on cam + label only.

    # ---- lane-dense spatial tiling: H*W -> (R, 128) -----------------------
    L = H * W
    R = -(-L // 128)                          # rows of 128 lanes
    itemsize = jnp.dtype(cam.dtype).itemsize
    tr_max = 4096 if itemsize <= 2 else 2048  # ~1-2 MiB channel tiles
    if R <= tr_max:
        TR = R                                # single tile, block == full dim
    else:
        # largest multiple-of-8 divisor of R (avoids padding); rare fallback
        # to tr_max (with padding) if R has no suitable divisor.
        TR = next((t for t in range(tr_max - tr_max % 8, 7, -8) if R % t == 0),
                  tr_max)
    R_pad = _round_up(R, TR)
    L_pad = R_pad * 128
    S = R_pad // TR                           # spatial tiles per sample

    cam_flat = cam.reshape(N, C, L)           # native dtype, free reshape
    if L_pad != L:
        # Rare fallback copy: only when H*W isn't a multiple of 128 (or R has
        # no tile-sized divisor).  Typical CAM sizes take the no-copy path.
        cam_flat = jnp.pad(cam_flat, ((0, 0), (0, 0), (0, L_pad - L)))
    cam_tiles = cam_flat.reshape(N, C, R_pad, 128)

    # bf16-native update path on bf16 CAMs (v6e/v7x VALU headroom); f32 else.
    compute_dtype = jnp.bfloat16 if cam.dtype == jnp.bfloat16 else jnp.float32

    # ---- per-sample compacted active-channel indices + counts (SMEM) ------
    mask = label > 0                                               # (N, C)
    act_cnt = mask.sum(axis=1).astype(jnp.int32)                   # (N,)
    # Stable sort keeps active channels first, in ascending original order,
    # which preserves argmax lowest-index-on-ties semantics.
    act_idx = jnp.argsort((~mask).astype(jnp.int32), axis=1, stable=True)
    act_idx = act_idx.reshape(-1).astype(jnp.int32)   # 1-D: no SMEM lane pad

    kernel = functools.partial(_pseudo_label_kernel,
                               num_channels=C,
                               bg_thresh=float(bg_thresh),
                               compute_dtype=compute_dtype)

    out = pl.pallas_call(
        kernel,
        out_shape=jax.ShapeDtypeStruct((N, R_pad, 128), jnp.int32),
        grid_spec=pltpu.PrefetchScalarGridSpec(
            num_scalar_prefetch=2,                 # act_idx, act_cnt -> SMEM
            grid=(N, S),                           # no channel grid axis
            in_specs=[
                pl.BlockSpec(memory_space=pl.ANY),  # cam stays in HBM
            ],
            out_specs=pl.BlockSpec(
                (1, TR, 128),
                lambda n, s, idx, cnt: (n, s, 0)),
            scratch_shapes=[
                pltpu.VMEM((2, TR, 128), cam.dtype),    # channel double buffer
                pltpu.SemaphoreType.DMA((2,)),
                pltpu.VMEM((TR, 128), compute_dtype),   # best score
                pltpu.VMEM((TR, 128), jnp.int32),       # best channel
            ],
        ),
        compiler_params=pltpu.CompilerParams(
            # (N, S) tiles are independent; v7x megacore may shard them.
            dimension_semantics=("parallel", "parallel"),
            vmem_limit_bytes=32 * 1024 * 1024,
        ),
    )(act_idx, act_cnt, cam_tiles)

    return out.reshape(N, L_pad)[:, :L].reshape(N, H, W)


class PseudoLabel:
    """JAX/Pallas counterpart of the PyTorch PseudoLabel module (no params)."""

    def __init__(self, method):
        assert isinstance(method, str), type(method)
        self.method = method

    def __call__(self, cam, image, label):
        return pseudo_label_from_cam(cam, image, label, self.method)


if __name__ == "__main__":
    key = jax.random.PRNGKey(0)
    k_cam, k_img, k_lab = jax.random.split(key, 3)

    N, C, H, W = 2, 4, 16, 16
    cam = jax.nn.sigmoid(jax.random.normal(k_cam, (N, C, H, W), jnp.float32))
    image = jax.random.normal(k_img, (N, 3, H, W), jnp.float32)
    # deterministic multi-hot image-level labels (at least one class active)
    label = (jax.random.uniform(k_lab, (N, C)) > 0.5).astype(jnp.float32)
    label = label.at[:, 0].set(1.0)

    model = PseudoLabel("naive")
    out = model(cam, image, label)
    jax.block_until_ready(out)

    assert out.shape == (N, H, W), out.shape
    assert out.dtype == jnp.int32, out.dtype

    # pure-JAX reference of the naive seed (masked argmax + bg threshold)
    masked = jnp.where(label[:, :, None, None] > 0,
                       cam.astype(jnp.float32), -jnp.inf)
    best = masked.max(axis=1)
    idx = masked.argmax(axis=1).astype(jnp.int32)
    ref = jnp.where(best >= BG_THRESH, idx + 1, 0).astype(jnp.int32)
    assert jnp.array_equal(out, ref), "mismatch vs pure-JAX reference"

    print("KERNEL_OK")
</pallas_src>

<mosaic_0001>
module attributes {stable_mosaic.version = 11 : i64} {
  func.func @_pseudo_label_kernel(%arg0: i32, %arg1: i32, %arg2: memref<8xi32, #tpu.memory_space<smem>>, %arg3: memref<2xi32, #tpu.memory_space<smem>>, %arg4: memref<2x4x2x128xf32, #tpu.memory_space<any>>, %arg5: memref<1x2x128xi32, #tpu.memory_space<vmem>>, %arg6: memref<2x2x128xf32, #tpu.memory_space<vmem>>, %arg7: memref<2x!tpu.dma_semaphore, #tpu.memory_space<semaphore_mem>>, %arg8: memref<2x128xf32, #tpu.memory_space<vmem>>, %arg9: memref<2x128xi32, #tpu.memory_space<vmem>>) attributes {dimension_semantics = [#tpu.dimension_semantics<parallel>, #tpu.dimension_semantics<parallel>], iteration_bounds = array<i64: 2, 1>, scalar_prefetch = 2 : i64, scratch_operands = 4 : i64, tpu.core_type = #tpu.core_type<tc>, window_params = [{}, {transform_indices = @transform_1, window_bounds = array<i64: 1, 2, 128>}]} {
    %c2_i32 = arith.constant 2 : i32
    %0 = arith.muli %arg1, %c2_i32 : i32
    %1 = arith.index_cast %arg0 : i32 to index
    %2 = memref.load %arg3[%1] : memref<2xi32, #tpu.memory_space<smem>>
    %c0_i32 = arith.constant 0 : i32
    %3 = arith.cmpi sgt, %2, %c0_i32 : i32
    %4 = arith.extui %3 : i1 to i32
    %c0_i32_0 = arith.constant 0 : i32
    %5 = arith.cmpi ne, %4, %c0_i32_0 : i32
    scf.if %5 {
      %c4_i32 = arith.constant 4 : i32
      %27 = arith.muli %arg0, %c4_i32 : i32
      %c0_i32_22 = arith.constant 0 : i32
      %28 = arith.addi %27, %c0_i32_22 : i32
      %29 = arith.index_cast %28 : i32 to index
      %30 = memref.load %arg2[%29] : memref<8xi32, #tpu.memory_space<smem>>
      %c0_i32_23 = arith.constant 0 : i32
      %c0_i32_24 = arith.constant 0 : i32
      %c0_i32_25 = arith.constant 0 : i32
      %31 = tpu.memref_slice %arg4[%arg0, %30, %0, %c0_i32_25] : memref<2x4x2x128xf32, #tpu.memory_space<any>> -> memref<1x1x2x128xf32, #tpu.memory_space<any>>
      %32 = tpu.memref_squeeze %31 : memref<1x1x2x128xf32, #tpu.memory_space<any>> -> memref<2x128xf32, #tpu.memory_space<any>>
      %c0_i32_26 = arith.constant 0 : i32
      %c0_i32_27 = arith.constant 0 : i32
      %33 = tpu.memref_slice %arg6[%c0_i32_23, %c0_i32_26, %c0_i32_27] : memref<2x2x128xf32, #tpu.memory_space<vmem>> -> memref<1x2x128xf32, #tpu.memory_space<vmem>>
      %34 = tpu.memref_squeeze %33 : memref<1x2x128xf32, #tpu.memory_space<vmem>> -> memref<2x128xf32, #tpu.memory_space<vmem>>
      %35 = tpu.memref_slice %arg7[%c0_i32_24] : memref<2x!tpu.dma_semaphore, #tpu.memory_space<semaphore_mem>> -> memref<1x!tpu.dma_semaphore, #tpu.memory_space<semaphore_mem>>
      %36 = tpu.memref_squeeze %35 : memref<1x!tpu.dma_semaphore, #tpu.memory_space<semaphore_mem>> -> memref<!tpu.dma_semaphore, #tpu.memory_space<semaphore_mem>>
      tpu.enqueue_dma source(%32 : memref<2x128xf32, #tpu.memory_space<any>>) target(%34 : memref<2x128xf32, #tpu.memory_space<vmem>>) target_semaphore(%36 : memref<!tpu.dma_semaphore, #tpu.memory_space<semaphore_mem>>)
    } else {
    }
    %cst = arith.constant 0xFF800000 : f32
    %6 = vector.broadcast %cst : f32 to vector<2x128xf32>
    %c0 = arith.constant 0 : index
    %c0_1 = arith.constant 0 : index
    %7 = vector.load %arg8[%c0, %c0_1] : memref<2x128xf32, #tpu.memory_space<vmem>>, vector<2x128xf32>
    tpu.vector_store %arg8[%c0, %c0_1], %6 {strides = array<i32>} : memref<2x128xf32, #tpu.memory_space<vmem>>, vector<2x128xf32>,
    %c0_i32_2 = arith.constant 0 : i32
    %8 = vector.broadcast %c0_i32_2 : i32 to vector<2x128xi32>
    %c0_3 = arith.constant 0 : index
    %c0_4 = arith.constant 0 : index
    %9 = vector.load %arg9[%c0_3, %c0_4] : memref<2x128xi32, #tpu.memory_space<vmem>>, vector<2x128xi32>
    tpu.vector_store %arg9[%c0_3, %c0_4], %8 {strides = array<i32>} : memref<2x128xi32, #tpu.memory_space<vmem>>, vector<2x128xi32>,
    %c0_i32_5 = arith.constant 0 : i32
    %10 = arith.subi %2, %c0_i32_5 : i32
    %c1_i32 = arith.constant 1 : i32
    %c1_i32_6 = arith.constant 1 : i32
    %11 = arith.subi %c1_i32, %c1_i32_6 : i32
    %12 = arith.addi %10, %11 : i32
    %c1_i32_7 = arith.constant 1 : i32
    %13 = arith.divsi %12, %c1_i32_7 : i32
    %c1_i32_8 = arith.constant 1 : i32
    %c0_i32_9 = arith.constant 0 : i32
    %c0_i32_10 = arith.constant 0 : i32
    %14 = arith.subi %13, %c0_i32_10 : i32
    %15 = arith.addi %c0_i32_10, %14 : i32
    %c1_i32_11 = arith.constant 1 : i32
    scf.for %arg10 = %c0_i32_10 to %15 step %c1_i32_11  : i32 {
      %27 = arith.muli %arg10, %c1_i32_8 : i32
      %28 = arith.addi %c0_i32_9, %27 : i32
      %c1_i32_22 = arith.constant 1 : i32
      %29 = arith.andi %28, %c1_i32_22 : i32
      %c0_i32_23 = arith.constant 0 : i32
      %c0_i32_24 = arith.constant 0 : i32
      %30 = tpu.memref_slice %arg4[%arg0, %c0_i32_23, %0, %c0_i32_24] : memref<2x4x2x128xf32, #tpu.memory_space<any>> -> memref<1x1x2x128xf32, #tpu.memory_space<any>>
      %31 = tpu.memref_squeeze %30 : memref<1x1x2x128xf32, #tpu.memory_space<any>> -> memref<2x128xf32, #tpu.memory_space<any>>
      %c0_i32_25 = arith.constant 0 : i32
      %c0_i32_26 = arith.constant 0 : i32
      %32 = tpu.memref_slice %arg6[%29, %c0_i32_25, %c0_i32_26] : memref<2x2x128xf32, #tpu.memory_space<vmem>> -> memref<1x2x128xf32, #tpu.memory_space<vmem>>
      %33 = tpu.memref_squeeze %32 : memref<1x2x128xf32, #tpu.memory_space<vmem>> -> memref<2x128xf32, #tpu.memory_space<vmem>>
      %34 = tpu.memref_slice %arg7[%29] : memref<2x!tpu.dma_semaphore, #tpu.memory_space<semaphore_mem>> -> memref<1x!tpu.dma_semaphore, #tpu.memory_space<semaphore_mem>>
      %35 = tpu.memref_squeeze %34 : memref<1x!tpu.dma_semaphore, #tpu.memory_space<semaphore_mem>> -> memref<!tpu.dma_semaphore, #tpu.memory_space<semaphore_mem>>
      tpu.wait_dma2 semaphore(%35 : memref<!tpu.dma_semaphore, #tpu.memory_space<semaphore_mem>>) src(%31 : memref<2x128xf32, #tpu.memory_space<any>>) dst(%33 : memref<2x128xf32, #tpu.memory_space<vmem>>)
      %c1_i32_27 = arith.constant 1 : i32
      %36 = arith.addi %28, %c1_i32_27 : i32
      %37 = arith.cmpi slt, %36, %2 : i32
      %38 = arith.extui %37 : i1 to i32
      %c0_i32_28 = arith.constant 0 : i32
      %39 = arith.cmpi ne, %38, %c0_i32_28 : i32
      scf.if %39 {
        %c1_i32_41 = arith.constant 1 : i32
        %56 = arith.addi %28, %c1_i32_41 : i32
        %c1_i32_42 = arith.constant 1 : i32
        %57 = arith.subi %c1_i32_42, %29 : i32
        %c4_i32_43 = arith.constant 4 : i32
        %58 = arith.muli %arg0, %c4_i32_43 : i32
        %59 = arith.addi %58, %56 : i32
        %60 = arith.index_cast %59 : i32 to index
        %61 = memref.load %arg2[%60] : memref<8xi32, #tpu.memory_space<smem>>
        %c0_i32_44 = arith.constant 0 : i32
        %62 = tpu.memref_slice %arg4[%arg0, %61, %0, %c0_i32_44] : memref<2x4x2x128xf32, #tpu.memory_space<any>> -> memref<1x1x2x128xf32, #tpu.memory_space<any>>
        %63 = tpu.memref_squeeze %62 : memref<1x1x2x128xf32, #tpu.memory_space<any>> -> memref<2x128xf32, #tpu.memory_space<any>>
        %c0_i32_45 = arith.constant 0 : i32
        %c0_i32_46 = arith.constant 0 : i32
        %64 = tpu.memref_slice %arg6[%57, %c0_i32_45, %c0_i32_46] : memref<2x2x128xf32, #tpu.memory_space<vmem>> -> memref<1x2x128xf32, #tpu.memory_space<vmem>>
        %65 = tpu.memref_squeeze %64 : memref<1x2x128xf32, #tpu.memory_space<vmem>> -> memref<2x128xf32, #tpu.memory_space<vmem>>
        %66 = tpu.memref_slice %arg7[%57] : memref<2x!tpu.dma_semaphore, #tpu.memory_space<semaphore_mem>> -> memref<1x!tpu.dma_semaphore, #tpu.memory_space<semaphore_mem>>
        %67 = tpu.memref_squeeze %66 : memref<1x!tpu.dma_semaphore, #tpu.memory_space<semaphore_mem>> -> memref<!tpu.dma_semaphore, #tpu.memory_space<semaphore_mem>>
        tpu.enqueue_dma source(%63 : memref<2x128xf32, #tpu.memory_space<any>>) target(%65 : memref<2x128xf32, #tpu.memory_space<vmem>>) target_semaphore(%67 : memref<!tpu.dma_semaphore, #tpu.memory_space<semaphore_mem>>)
      } else {
      }
      %40 = arith.index_cast %29 : i32 to index
      %c0_29 = arith.constant 0 : index
      %c0_30 = arith.constant 0 : index
      %41 = vector.load %arg6[%40, %c0_29, %c0_30] : memref<2x2x128xf32, #tpu.memory_space<vmem>>, vector<1x2x128xf32>
      %42 = vector.shape_cast %41 : vector<1x2x128xf32> to vector<2x128xf32>
      %c0_31 = arith.constant 0 : index
      %c0_32 = arith.constant 0 : index
      %43 = vector.load %arg8[%c0_31, %c0_32] : memref<2x128xf32, #tpu.memory_space<vmem>>, vector<2x128xf32>
      %44 = arith.cmpf ogt, %42, %43 : vector<2x128xf32>
      %c4_i32 = arith.constant 4 : i32
      %45 = arith.muli %arg0, %c4_i32 : i32
      %46 = arith.addi %45, %28 : i32
      %47 = arith.index_cast %46 : i32 to index
      %48 = memref.load %arg2[%47] : memref<8xi32, #tpu.memory_space<smem>>
      %c0_33 = arith.constant 0 : index
      %c0_34 = arith.constant 0 : index
      %49 = vector.load %arg9[%c0_33, %c0_34] : memref<2x128xi32, #tpu.memory_space<vmem>>, vector<2x128xi32>
      %50 = vector.broadcast %48 : i32 to vector<2x128xi32>
      %51 = arith.select %44, %50, %49 : vector<2x128xi1>, vector<2x128xi32>
      %c0_35 = arith.constant 0 : index
      %c0_36 = arith.constant 0 : index
      %52 = vector.load %arg9[%c0_35, %c0_36] : memref<2x128xi32, #tpu.memory_space<vmem>>, vector<2x128xi32>
      tpu.vector_store %arg9[%c0_35, %c0_36], %51 {strides = array<i32>} : memref<2x128xi32, #tpu.memory_space<vmem>>, vector<2x128xi32>,
      %c0_37 = arith.constant 0 : index
      %c0_38 = arith.constant 0 : index
      %53 = vector.load %arg8[%c0_37, %c0_38] : memref<2x128xf32, #tpu.memory_space<vmem>>, vector<2x128xf32>
      %54 = arith.select %44, %42, %53 : vector<2x128xi1>, vector<2x128xf32>
      %c0_39 = arith.constant 0 : index
      %c0_40 = arith.constant 0 : index
      %55 = vector.load %arg8[%c0_39, %c0_40] : memref<2x128xf32, #tpu.memory_space<vmem>>, vector<2x128xf32>
      tpu.vector_store %arg8[%c0_39, %c0_40], %54 {strides = array<i32>} : memref<2x128xf32, #tpu.memory_space<vmem>>, vector<2x128xf32>,
    }
    %c0_12 = arith.constant 0 : index
    %c0_13 = arith.constant 0 : index
    %16 = vector.load %arg8[%c0_12, %c0_13] : memref<2x128xf32, #tpu.memory_space<vmem>>, vector<2x128xf32>
    %cst_14 = arith.constant 2.500000e-01 : f32
    %17 = vector.broadcast %cst_14 : f32 to vector<2x128xf32>
    %18 = arith.cmpf oge, %16, %17 : vector<2x128xf32>
    %c0_15 = arith.constant 0 : index
    %c0_16 = arith.constant 0 : index
    %19 = vector.load %arg9[%c0_15, %c0_16] : memref<2x128xi32, #tpu.memory_space<vmem>>, vector<2x128xi32>
    %c1_i32_17 = arith.constant 1 : i32
    %20 = vector.broadcast %c1_i32_17 : i32 to vector<2x128xi32>
    %21 = arith.addi %19, %20 : vector<2x128xi32>
    %c0_i32_18 = arith.constant 0 : i32
    %22 = vector.broadcast %c0_i32_18 : i32 to vector<2x128xi32>
    %23 = arith.select %18, %21, %22 : vector<2x128xi1>, vector<2x128xi32>
    %c0_19 = arith.constant 0 : index
    %c0_20 = arith.constant 0 : index
    %c0_21 = arith.constant 0 : index
    %24 = vector.load %arg5[%c0_19, %c0_20, %c0_21] : memref<1x2x128xi32, #tpu.memory_space<vmem>>, vector<1x2x128xi32>
    %25 = vector.shape_cast %24 : vector<1x2x128xi32> to vector<2x128xi32>
    %26 = vector.shape_cast %23 : vector<2x128xi32> to vector<1x2x128xi32>
    tpu.vector_store %arg5[%c0_19, %c0_20, %c0_21], %26 {strides = array<i32>} : memref<1x2x128xi32, #tpu.memory_space<vmem>>, vector<1x2x128xi32>,
    return
  }
  func.func @transform_1(%arg0: i32, %arg1: i32, %arg2: memref<8xi32, #tpu.memory_space<smem>>, %arg3: memref<2xi32, #tpu.memory_space<smem>>) -> (i32, i32, i32) {
    %c0_i32 = arith.constant 0 : i32
    %c0_i32_0 = arith.constant 0 : i32
    return %arg0, %arg1, %c0_i32 : i32, i32, i32
  }
}

</mosaic_0001>

<bundles_post_ra>
// kernel: tpu_custom_call.1
= control target key start
LH: loop header
LB: loop body
LE: loop exit
PB: predicated region body
PF: predicated region fallthrough
CT: control target
= control target key end

     0   :  { %s734_s0 = inlined_call_operand.hbm [shape: s32[8], index: 0, kind: input, shape index: {}]   ;;  %s735_s2 = inlined_call_operand.hbm [shape: f32[2,4,2,128], index: 2, kind: input, shape index: {}]   ;;  %s736_s3 = inlined_call_operand.hbm [shape: s32[2,2,128], index: 3, kind: output, shape index: {}]   ;;  %s737_s1 = inlined_call_operand.vmem [shape: s32[2], index: 1, kind: input, shape index: {}]  }
   0x1   :  { %s343_s14 = scalar_lea.hbm %s734_s0, 16 }
   0x2   :  { %p344_p0 = scmp.ne.s32.totalorder %s734_s0, %s343_s14  ;;  %p347_p1 = scmp.lt.u32.totalorder %s343_s14, %s734_s0 }
   0x4   :  { %p349_p2 = pnand %p347_p1, %p344_p0 }
   0x6   :  { %352 = shalt.err (!%p349_p2)  }
   0x7   :  { %s497_s19 = smov [#allocation7]   ;;  %s10_s24 = sshll.u32 %s737_s1, 4  ;;  %s11_s24 = int_to_ptr.vmem [resolvable:$true] %s10_s24 }
   0x8   :  { %9 = dma.hbm_to_smem %s734_s0, 16, %s497_s19, [#allocation6] }
   0x9   :  { %s353_s25 = scalar_lea.vmem %s11_s24, 16  ;;  %p358_p4 = scmp.lt.s32.totalorder %s11_s24, %s11_s24 }
   0xa   :  { %p354_p3 = scmp.ne.s32.totalorder %s11_s24, %s353_s25  ;;  %p359_p5 = scmp.lt.s32.totalorder %s353_s25, %s353_s25 }
   0xc   :  { %p360_p6 = por %p359_p5, %p358_p4 }
   0xe   :  { %p361_p7 = pnand %p360_p6, %p354_p3 }
  0x10   :  { %364 = shalt.err (!%p361_p7)  }
  0x11   :  { %s498_s26 = smov [#allocation8]  }
  0x12   :  { %13 = dma.vmem_to_smem %s11_s24, 16, %s498_s26, [#allocation6] }
  0x13   :  { %469 = dma.done.wait [#allocation6], 32 }
  0x14   :  { %470 = vsyncadd [#allocation6], 4294967264 }
  0x15   :  { %15 = sfence }
  0x16   :  { %16 = vsyncpa [#allocation10], 0 }
  0x17   :  { %18 = vsyncpa [#allocation10 + $0x1], 0  ;;  %s538_s0 = smov 0   ;;  %s540_s27 = smov 0  }
  0x18   :  { %s542_s1 = smov 0   ;;  %s544_s28 = smov 0  }
  0x19 LB: > { %747 = sst [smem:[#allocation22_spill]] %s479_s0  ;;  %s33_s29 = sadd.s32 1, %s487_s1  ;;  %s491_s28 = sphi %s544_s28, %s24_s28   ;;  %s487_s1 = sphi %s542_s1, %s769_s1   ;;  %s483_s27 = sphi %s540_s27, %s771_s27   ;;  %s479_s0 = sphi %s538_s0, %s770_s0  }
  0x1a   : > { %748 = sst [smem:[#allocation23_spill]] %s491_s28  ;;  %s257_s30 = sadd.s32 4294967295, %s491_s28  }
  0x1b   : > { %p35_p8 = scmp.ge.s32.totalorder %s33_s29, 2  ;;  %p51_p9 = scmp.ne.s32.totalorder %s483_s27, %s479_s0 }
  0x1c   : > { %s42_s4 = sadd.s32 1, %s483_s27  ;;  %p52_p10 = scmp.eq.s32.totalorder %s257_s30, 1 }
  0x1d   : > { %s773_s29 = smov (%p35_p8, %s33_s29), 0  ;;  %p46_p11 = scmp.eq.s32.totalorder %s491_s28, 1 }
  0x1e   : > { %749 = sst [smem:[#allocation24_spill]] %s773_s29  ;;  %s37_s5 = ssub.s32 %s487_s1, %s773_s29 }
  0x1f   : > { %p40_p12 = scmp.eq.s32.totalorder %s37_s5, 0  ;;  %p258_p13 = scmp.ne.s32.totalorder %s37_s5, 0 }
  0x20   : > { %p568_p0 = por %p52_p10, %p51_p9  ;;  %p259_p2 = scmp.ge.s32.totalorder %s491_s28, 2 }
  0x21   : > { %s573_s7 = scalar_select %p40_p12, %s483_s27, %s42_s4  }
  0x22   : > { %s750_s6 = scalar_select %p568_p0, 1, 0 }
  0x23   : > { %752 = sst [smem:[#allocation26_spill]] %s573_s7  ;;  %p575_p1 = por %p258_p13, %p46_p11  ;;  %v499_v0 = vmov (!%p259_p2), -inf   ;;  %v500_v1 = vmov (!%p259_p2), 0  }
  0x24   : > { %751 = sst [smem:[#allocation25_spill]] %s750_s6  ;;  %61 = sbr.rel (%p259_p2) target bundleno = 165 (0xa5), region = 12  ;;  %94 = vst [vmem:[#allocation4] sm:$0x3] (!%p259_p2), %v499_v0  ;;  %95 = vst [vmem:[#allocation5] sm:$0x3] (!%p259_p2), %v500_v1 }
  0x25   : > { %s753_s8 = scalar_select %p575_p1, 1, 0 }
  0x26   : > { %s738_s9 = sand.u32 (!%p259_p2), 1, %s483_s27   ;;  %s582_s10 = sld [smem:[#allocation8 + %s487_s1]] (!%p259_p2) }
  0x27   : > { %s586_s11 = sshll.u32 (!%p259_p2), %s738_s9, 1  ;;  %s589_s12 = sshll.u32 (!%p259_p2), %s487_s1, 2 }
  0x28   : > { %s264_s16 = sshll.u32 (!%p259_p2), %s487_s1, 3  ;;  %s501_s17 = smov (!%p259_p2), [#allocation2]  }
  0x29   : > { %s90_s18 = sshll.u32 (!%p259_p2), %s501_s17, 4  ;;  %s740_s4 = scalar_lea.hbm (!%p259_p2), %s735_s2, 256  ;;  %s601_s18 = int_to_ptr.vmem [resolvable:$true] %s90_s18 }
  0x2c   : > { %p295_p4 = scmp.gt.s32.totalorder %s582_s10, 0 }
  0x2e   : > { %s282_s13 = scalar_select %p295_p4, [#allocation7], [#allocation17] }
  0x2f   : > { %s283_s14 = scalar_select %p295_p4, %s589_s12, 0 }
  0x31   : > { %s76_s15 = sld [smem:[%s282_s13 + %s283_s14]] }
  0x37   : > { %s263_s19 = sshll.u32 %s76_s15, 1 }
  0x38   : > { %s80_s20 = sadd.s32 %s264_s16, %s263_s19 }
  0x39   : > { %s265_s21 = sshll.u32 %s80_s20, 4 }
  0x3a   : > { %s82_s24 = scalar_lea.hbm %s735_s2, %s265_s21 }
  0x3b   : > { %s365_s25 = scalar_lea.hbm %s82_s24, 32  ;;  %p370_p8 = scmp.lt.u32.totalorder %s82_s24, %s735_s2 }
  0x3c   : > { %p366_p5 = scmp.ne.s32.totalorder %s82_s24, %s365_s25  ;;  %p371_p9 = scmp.lt.u32.totalorder %s740_s4, %s365_s25 }
  0x3d   : > { %p373_p11 = scmp.lt.u32.totalorder %s365_s25, %s82_s24 }
  0x3e   : > { %p367_p6 = pnand %p366_p5, %p295_p4  ;;  %p372_p10 = por %p371_p9, %p370_p8 }
  0x40   : > { %p368_p7 = pneg %p367_p6  ;;  %p374_p12 = por %p373_p11, %p372_p10 }
  0x42   : > { %p375_p13 = pnand %p374_p12, %p368_p7 }
  0x44   : > { %378 = shalt.err (!%p375_p13)  }
  0x45   : > { %s379_s17 = scalar_lea.vmem %s601_s18, 32  ;;  %s739_s19 = scalar_lea.vmem %s601_s18, 64 }
  0x46   : > { %p380_p2 = scmp.ne.s32.totalorder %s601_s18, %s379_s17  ;;  %p386_p3 = scmp.lt.s32.totalorder %s601_s18, %s601_s18 }
  0x47   : > { %p387_p8 = scmp.lt.s32.totalorder %s739_s19, %s379_s17 }
  0x48   : > { %p381_p5 = pnand %p380_p2, %p295_p4 }
  0x49   : > { %p388_p9 = por %p387_p8, %p386_p3 }
  0x4a   : > { %p382_p6 = pneg %p381_p5 }
  0x4c   : > { %p389_p10 = pnand %p388_p9, %p382_p6 }
  0x4e   : > { %392 = shalt.err (!%p389_p10)  }
  0x4f   : > { %284 = dma.hbm_to_vmem [thread:$0]  (%p295_p4), %s82_s24, 32, %s601_s18, [#allocation3] }
  0x50   : > { %p754_p7 = scmp.le.s32.totalorder %s582_s10, 0 }
  0x51   : > { %s633_s21 = smov (!%p754_p7), 0  }
  0x52   : > { %240 = sbr.rel (%p754_p7) target bundleno = 138 (0x8a), region = 68 }
  0x59 LB: >> { %s102_s22 = sand.u32 1, %s495_s21  ;;  %s495_s21 = sphi %s633_s21, %s758_s21  }
  0x5a   : >> { %s267_s23 = sshll.u32 %s102_s22, 1  ;;  %s105_s26 = scalar_lea.sflag [#allocation3], %s102_s22 }
  0x5b   : >> { %s636_s25 = scalar_lea.vmem [#allocation2], %s267_s23 }
  0x5c   : >> { %471 = dma.done.wait %s105_s26, 32 }
  0x5d   : >> { %472 = vsyncadd %s105_s26, 4294967264  ;;  %s638_s24 = sadd.s32 1, %s495_s21   ;;  %s114_s30 = ssub.s32 1, %s102_s22 }
  0x5e   : >> { %p644_p4 = scmp.lt.s32.totalorder %s638_s24, %s582_s10  ;;  %s116_s13 = sadd.s32 %s589_s12, %s638_s24 }
  0x5f   : >> { %s273_s14 = sshll.u32 %s114_s30, 1  ;;  %s142_s9 = sadd.s32 %s495_s21, %s589_s12 }
  0x60   : >> { %s286_s15 = scalar_select %p644_p4, [#allocation7], [#allocation18] }
  0x61   : >> { %s775_s13 = smov (!%p644_p4, %s116_s13), 0  ;;  %s125_s23 = scalar_lea.vmem [#allocation2], %s273_s14 }
  0x62   : >> { %s117_s17 = sld [smem:[%s286_s15 + %s775_s13]]  ;;  %s134_s26 = sshll.u32 %s125_s23, 4  ;;  %s135_s26 = int_to_ptr.vmem [resolvable:$true] %s134_s26 }
  0x63   : >> { %s143_s4 = sld [smem:[#allocation7 + %s142_s9]]  ;;  %s126_s0 = scalar_lea.sflag [#allocation3], %s114_s30 }
  0x68   : >> { %s270_s20 = sshll.u32 %s117_s17, 1 }
  0x69   : >> { %s121_s22 = sadd.s32 %s270_s20, %s264_s16  ;;  %s756_s20 = scalar_lea.hbm %s735_s2, 256 }
  0x6a   : >> { %s272_s19 = sshll.u32 %s121_s22, 4 }
  0x6b   : >> { %s123_s6 = scalar_lea.hbm %s735_s2, %s272_s19 }
  0x6c   : >> { %s393_s28 = scalar_lea.hbm %s123_s6, 32  ;;  %p398_p2 = scmp.lt.u32.totalorder %s123_s6, %s735_s2 }
  0x6d   : >> { %p394_p11 = scmp.ne.s32.totalorder %s123_s6, %s393_s28  ;;  %p399_p5 = scmp.lt.u32.totalorder %s756_s20, %s393_s28 }
  0x6e   : >> { %p401_p8 = scmp.lt.u32.totalorder %s393_s28, %s123_s6 }
  0x6f   : >> { %p395_p12 = pnand %p394_p11, %p644_p4  ;;  %p400_p6 = por %p399_p5, %p398_p2 }
  0x71   : >> { %p396_p13 = pneg %p395_p12  ;;  %p402_p9 = por %p401_p8, %p400_p6 }
  0x73   : >> { %p403_p10 = pnand %p402_p9, %p396_p13 }
  0x75   : >> { %406 = shalt.err (!%p403_p10)  }
  0x76   : >> { %s407_s29 = scalar_lea.vmem %s135_s26, 32  ;;  %p414_p3 = scmp.lt.s32.totalorder %s135_s26, %s601_s18 }
  0x77   : >> { %p408_p7 = scmp.ne.s32.totalorder %s135_s26, %s407_s29  ;;  %s757_s7 = scalar_lea.vmem %s601_s18, 64 }
  0x78   : >> { %p415_p0 = scmp.lt.s32.totalorder %s757_s7, %s407_s29 }
  0x79   : >> { %p409_p11 = pnand %p408_p7, %p644_p4 }
  0x7a   : >> { %p416_p1 = por %p415_p0, %p414_p3 }
  0x7b   : >> { %p410_p12 = pneg %p409_p11 }
  0x7d   : >> { %p417_p2 = pnand %p416_p1, %p410_p12 }
  0x7f   : >> { %420 = shalt.err (!%p417_p2)  }
  0x80   : >> { %288 = dma.hbm_to_vmem [thread:$0]  (%p644_p4), %s123_s6, 32, %s135_s26, %s126_s0  ;;  %v139_v2 = vld [vmem:[#allocation4] sm:$0x3]  ;;  %v144_v3 = vld [vmem:[#allocation5] sm:$0x3]  ;;  %v145_v4 = vstv %s143_s4 }
  0x81   : >> { %v148_v5 = vld [vmem:[#allocation4] sm:$0x3]  ;;  %v138_v6 = vld [vmem:[%s636_s25] sm:$0x3]  ;;  %s758_s21 = smov %s638_s24  ;;  %p759_p0 = scmp.ge.s32.totalorder %s638_s24, %s582_s10 }
  0x82   : >> { %vm140_vm0 = vcmp.gt.f32.partialorder %v138_v6, %v139_v2 }
  0x83   : >> { %v146_v7 = vsel %vm140_vm0, %v145_v4, %v144_v3  ;;  %v149_v8 = vsel %vm140_vm0, %v138_v6, %v148_v5  ;;  %101 = sbr.rel (!%p759_p0) target bundleno = 89 (0x59), region = 74 }
  0x84   : >> { %147 = vst [vmem:[#allocation5] sm:$0x3] %v146_v7  ;;  %150 = vst [vmem:[#allocation4] sm:$0x3] %v149_v8 }
  0x8a PF: > { %s276_s0 = sshll.u32 %s487_s1, 5  ;;  %s760_s28 = scalar_lea.vmem [#allocation9], %s586_s11 }
  0x8b   : > { %v151_v9 = vld [vmem:[#allocation4] sm:$0x3]  ;;  %v153_v10 = vld [vmem:[#allocation5] sm:$0x3]  ;;  %s172_s6 = sshll.u32 %s760_s28, 4  ;;  %s689_s19 = scalar_lea.hbm %s736_s3, %s276_s0  ;;  %s691_s6 = int_to_ptr.vmem [resolvable:$true] %s172_s6 }
  0x8c   : > { %vm152_vm1 = vcmp.ge.f32.partialorder %v151_v9, 0.25  ;;  %v154_v11 = vadd.s32 1, %v153_v10  ;;  %s761_s10 = smov %s760_s28  ;;  %s762_s12 = sand.u32 1, %s483_s27  }
  0x8d   : > { %s158_s16 = scalar_lea.sflag [#allocation10], %s762_s12  ;;  %s421_s1 = scalar_lea.vmem %s691_s6, 32 }
  0x8e   : > { %v155_v12 = vsel %vm152_vm1, %v154_v11, 0  ;;  %p422_p1 = scmp.ne.s32.totalorder %s691_s6, %s421_s1  ;;  %p763_p3 = scmp.ne.s32.totalorder %s753_s8, 0 }
  0x8f   : > { %156 = vst [vmem:[%s761_s10] sm:$0x3] %v155_v12  ;;  %s502_s18 = smov [#allocation9]  }
  0x90   : > { %p423_p4 = pnand %p422_p1, %p763_p3  ;;  %s425_s25 = sshll.u32 %s502_s18, 4  ;;  %s426_s25 = int_to_ptr.vmem [resolvable:$false] %s425_s25 }
  0x91   : > { %s427_s24 = scalar_lea.vmem %s426_s25, 64  ;;  %p428_p5 = scmp.lt.s32.totalorder %s691_s6, %s426_s25 }
  0x92   : > { %p424_p13 = pneg %p423_p4  ;;  %p429_p6 = scmp.lt.s32.totalorder %s427_s24, %s421_s1 }
  0x94   : > { %p430_p8 = por %p429_p6, %p428_p5 }
  0x96   : > { %p431_p9 = pnand %p430_p8, %p424_p13 }
  0x98   : > { %434 = shalt.err (!%p431_p9)
}
  0x99   : > { %s435_s11 = scalar_lea.hbm %s689_s19, 32  ;;  %s439_s17 = scalar_lea.hbm %s736_s3, 64 }
  0x9a   : > { %p436_p10 = scmp.ne.s32.totalorder %s689_s19, %s435_s11  ;;  %p440_p12 = scmp.lt.u32.totalorder %s689_s19, %s736_s3 }
  0x9b   : > { %p441_p2 = scmp.lt.u32.totalorder %s439_s17, %s435_s11  ;;  %p443_p1 = scmp.lt.u32.totalorder %s435_s11, %s689_s19 }
  0x9c   : > { %p437_p7 = pnand %p436_p10, %p763_p3 }
  0x9d   : > { %p442_p0 = por %p441_p2, %p440_p12 }
  0x9e   : > { %p438_p11 = pneg %p437_p7 }
  0x9f   : > { %p444_p4 = por %p443_p1, %p442_p0 }
  0xa1   : > { %p445_p13 = pnand %p444_p4, %p438_p11 }
  0xa3   : > { %448 = shalt.err (!%p445_p13)
}
  0xa4   : > { %289 = dma.vmem_to_hbm [thread:$0]  (%p763_p3), %s691_s6, 32, %s689_s19, %s158_s16  }
  0xa5 PF: > { %s764_s22 = sld [smem:[#allocation23_spill]]  ;;  %s765_s13 = sld [smem:[#allocation22_spill]] }
  0xa6   : > { %s766_s14 = sld [smem:[#allocation25_spill]] }
  0xab   : > { %p297_p5 = scmp.ge.s32.totalorder %s764_s22, 1  ;;  %s184_s21 = sand.u32 1, %s765_s13  }
  0xac   : > { %p767_p6 = scmp.ne.s32.totalorder %s766_s14, 0  ;;  %s185_s15 = scalar_lea.sflag [#allocation10], %s184_s21 }
  0xae   : > { %p292_p8 = pnand %p297_p5, %p767_p6 }
  0xb0   : > { %474 = dma.done.wait (!%p292_p8), %s185_s15, 32  }
  0xb1   : > { %476 = vsyncadd (!%p292_p8), %s185_s15, 4294967264  ;;  %s24_s28 = sadd.s32 1, %s764_s22   ;;  %s768_s20 = sld [smem:[#allocation26_spill]] }
  0xb2   : > { %p21_p9 = scmp.ge.s32.totalorder %s24_s28, 3   ;;  %s769_s1 = sld [smem:[#allocation24_spill]] }
  0xb3   : > { %s770_s0 = smov %s483_s27 }
  0xb4   :  { %23 = sbr.rel (!%p21_p9) target bundleno = 25 (0x19), region = 85 }
  0xb7   : > { %s771_s27 = smov %s768_s20 }
  0xbb   :  { %190 = vsyncpa [#allocation10], 1 }
  0xbc   :  { %192 = vsyncpa [#allocation10 + $0x1], 1 }
  0xbd   :  { %193 = vsyncmov [#allocation3] }
  0xc0   :  { %s194_s8 = vpop.sfrf %193 }
  0xc1   :  { %p279_p3 = scmp.ne.s32.totalorder %s194_s8, 0 }
  0xc3   :  { %198 = shalt.err (%p279_p3)  }
  0xc4   :  { %200 = vsyncmov [#allocation3 + $0x1] }
  0xc7   :  { %s201_s29 = vpop.sfrf %200 }
  0xc8   :  { %p280_p10 = scmp.ne.s32.totalorder %s201_s29, 0 }
  0xca   :  { %205 = shalt.err (%p280_p10)  }

</bundles_post_ra>
